<compile_context>
chip_gen: v5e
topology: v5e:2x2
jax: 0.10.0
libtpu: 0.0.40
codegen_flags: <defaults>
</compile_context>

<pallas_src>
import jax
import jax.numpy as jnp
from jax.experimental import pallas as pl
from jax.experimental.pallas import tpu as pltpu


def scale_kernel(bias_ref, x_ref, out_ref):
    # bias_ref: (1,) in SMEM (scalar path); x_ref/out_ref: (sub, lane) VMEM tiles.
    out_ref[...] = x_ref[...] * bias_ref[0]


def _sublane_multiple(dtype):
    # Minimum legal sublane tile: 8 for 32-bit, 16 for bf16, 32 for int8/fp8.
    return max(8, 32 // jnp.dtype(dtype).itemsize)


def _vmem_capacity_bytes():
    # Trace-time hardware query; fall back to the smallest (v7x) if unavailable.
    try:
        return int(pltpu.get_tpu_info().vmem_capacity_bytes)
    except Exception:
        return 64 << 20


def learnable_coefficient(x, bias):
    """out = x * bias (scalar learnable coefficient). Any-shape x."""
    orig_shape = x.shape
    dtype = x.dtype
    total = x.size
    itemsize = jnp.dtype(dtype).itemsize
    sub_min = _sublane_multiple(dtype)

    # Module spec: float32 parameter, float32 activations -> product in f32.
    # We keep compute in x.dtype (matches PyTorch for the f32 case).
    bias = jnp.asarray(bias, dtype=dtype).reshape((1,))

    # --- Lane width: largest multiple of 128 (<= 512) dividing `total`, so the
    # common case needs no padding and no trailing output slice (both would be
    # full extra HBM passes on a purely bandwidth-bound op). ---
    lane = 0
    for cand in (512, 384, 256, 128):
        if total % cand == 0:
            lane = cand
            break

    if lane:
        pad = 0
        x2d = jnp.reshape(x, (total // lane, lane))
    else:
        # Genuinely ragged size: rare fallback, pad up to one 128-lane row.
        lane = 128
        pad = (-total) % lane
        x2d = jnp.pad(jnp.ravel(x), (0, pad)).reshape(-1, lane)

    rows = x2d.shape[0]
    row_bytes = lane * itemsize

    # --- Row-tile size: target ~2 MiB/tile; cap so the resident footprint
    # (in + out, double-buffered => 4 x tile) stays well inside scoped VMEM
    # even on v7x (64 MiB physical / 32 MiB scoped). ---
    vmem_cap = _vmem_capacity_bytes()
    tile_cap_bytes = min(4 << 20, vmem_cap // 16)
    target_tile_bytes = min(2 << 20, tile_cap_bytes)

    if rows <= sub_min:
        sub = rows  # full-extent rows block (tiny input, single grid step)
    else:
        sub = max(sub_min, (target_tile_bytes // row_bytes) // sub_min * sub_min)
        if sub >= rows:
            # Whole array would fit a single tile: split ~evenly into >= 2
            # blocks so both v7x TensorCores get work (negligible cost on
            # single-TC v5e/v6e).
            half = -(-rows // 2)
            sub = -(-half // sub_min) * sub_min

    n_blocks = pl.cdiv(rows, sub)
    tile_bytes = sub * lane * itemsize
    resident_bytes = 4 * tile_bytes  # in + out, 2 pipeline buffers each
    vmem_limit = int(min(max(3 * resident_bytes, 16 << 20), vmem_cap))

    cost = pl.CostEstimate(
        flops=total,
        transcendentals=0,
        bytes_accessed=2 * total * itemsize,
    )

    out2d = pl.pallas_call(
        scale_kernel,
        out_shape=jax.ShapeDtypeStruct(x2d.shape, dtype),
        grid=(n_blocks,),
        in_specs=[
            # Scalar parameter -> SMEM, resident across all grid steps.
            pl.BlockSpec((1,), lambda i: (0,),
                         memory_space=pltpu.MemorySpace.SMEM),
            # Lane-dense (sub, lane) row tiles, software-pipelined over the
            # grid; the final block may be partial (OOB writes are masked).
            pl.BlockSpec((sub, lane), lambda i: (i, 0)),
        ],
        out_specs=pl.BlockSpec((sub, lane), lambda i: (i, 0)),
        compiler_params=pltpu.CompilerParams(
            dimension_semantics=("parallel",),   # megacore sharding on v7x
            vmem_limit_bytes=vmem_limit,
        ),
        cost_estimate=cost,
    )(bias, x2d)

    if pad:
        return out2d.reshape(-1)[:total].reshape(orig_shape)
    return out2d.reshape(orig_shape)


if __name__ == "__main__":
    key = jax.random.PRNGKey(0)
    kx, kb, k2, k3 = jax.random.split(key, 4)

    # Primary small feature-map input, consistent with how the module is used.
    B, C, H, W = 2, 4, 16, 16
    x = jax.random.normal(kx, (B, C, H, W), dtype=jnp.float32)
    # Module initializes bias to 1.0; perturb it deterministically so the
    # multiply is exercised non-trivially (it is a learnable parameter).
    bias = jnp.float32(1.0) + 0.5 * jax.random.normal(kb, (), dtype=jnp.float32)

    out = jax.block_until_ready(learnable_coefficient(x, bias))
    ref = x * bias
    assert out.shape == x.shape and out.dtype == x.dtype
    assert jnp.allclose(out, ref, atol=1e-6, rtol=1e-6)

    # Multi-block path (>= 2 pipelined grid steps, megacore-shardable).
    x2 = jax.random.normal(k2, (4, 8, 32, 32), dtype=jnp.float32)
    out2 = jax.block_until_ready(learnable_coefficient(x2, bias))
    assert jnp.allclose(out2, x2 * bias, atol=1e-6, rtol=1e-6)

    # Ragged-size fallback path (pad + slice, rare).
    x3 = jax.random.normal(k3, (3, 5, 7), dtype=jnp.float32)
    out3 = jax.block_until_ready(learnable_coefficient(x3, bias))
    assert jnp.allclose(out3, x3 * bias, atol=1e-6, rtol=1e-6)

    print("KERNEL_OK")
</pallas_src>

<mosaic_0001>
module attributes {stable_mosaic.version = 11 : i64} {
  func.func @scale_kernel(%arg0: i32, %arg1: memref<1xf32, #tpu.memory_space<smem>>, %arg2: memref<4x512xf32, #tpu.memory_space<vmem>>, %arg3: memref<4x512xf32, #tpu.memory_space<vmem>>) attributes {dimension_semantics = [#tpu.dimension_semantics<parallel>], iteration_bounds = array<i64: 1>, scalar_prefetch = 0 : i64, scratch_operands = 0 : i64, tpu.core_type = #tpu.core_type<tc>, window_params = [{transform_indices = @transform_0, window_bounds = array<i64: 1>}, {transform_indices = @transform_1, window_bounds = array<i64: 4, 512>}, {transform_indices = @transform_2, window_bounds = array<i64: 4, 512>}]} {
    %c0 = arith.constant 0 : index
    %c0_0 = arith.constant 0 : index
    %0 = vector.load %arg2[%c0, %c0_0] : memref<4x512xf32, #tpu.memory_space<vmem>>, vector<4x512xf32>
    %c0_1 = arith.constant 0 : index
    %1 = memref.load %arg1[%c0_1] : memref<1xf32, #tpu.memory_space<smem>>
    %2 = vector.broadcast %1 : f32 to vector<4x512xf32>
    %3 = arith.mulf %0, %2 : vector<4x512xf32>
    %c0_2 = arith.constant 0 : index
    %c0_3 = arith.constant 0 : index
    %4 = vector.load %arg3[%c0_2, %c0_3] : memref<4x512xf32, #tpu.memory_space<vmem>>, vector<4x512xf32>
    tpu.vector_store %arg3[%c0_2, %c0_3], %3 {strides = array<i32>} : memref<4x512xf32, #tpu.memory_space<vmem>>, vector<4x512xf32>,
    return
  }
  func.func @transform_0(%arg0: i32) -> i32 {
    %c0_i32 = arith.constant 0 : i32
    %c0_i32_0 = arith.constant 0 : i32
    return %c0_i32 : i32
  }
  func.func @transform_1(%arg0: i32) -> (i32, i32) {
    %c0_i32 = arith.constant 0 : i32
    %c0_i32_0 = arith.constant 0 : i32
    return %arg0, %c0_i32 : i32, i32
  }
  func.func @transform_2(%arg0: i32) -> (i32, i32) {
    %c0_i32 = arith.constant 0 : i32
    %c0_i32_0 = arith.constant 0 : i32
    return %arg0, %c0_i32 : i32, i32
  }
}

</mosaic_0001>

<bundles_post_ra>
// kernel: tpu_custom_call.1
= control target key start
LH: loop header
LB: loop body
LE: loop exit
PB: predicated region body
PF: predicated region fallthrough
CT: control target
= control target key end

     0   :  { %8 = vsyncpa [#allocation4], 0  ;;  %s132_s0 = inlined_call_operand.<no memory space> [shape: f32[1], index: 0, kind: input, shape index: {}]   ;;  %s133_s1 = inlined_call_operand.hbm [shape: f32[4,512], index: 1, kind: input, shape index: {}]   ;;  %s134_s2 = inlined_call_operand.hbm [shape: f32[4,512], index: 2, kind: output, shape index: {}]  }
   0x1   :  { %9 = vsyncpa [#allocation5], 0  ;;  %s17_s11 = sshll.u32 %s133_s1, 4  ;;  %s106_s12 = smov [#allocation3]   ;;  %s18_s11 = int_to_ptr.hbm [resolvable:$true] %s17_s11 }
   0x2   :  { %s19_s13 = sshll.u32 %s106_s12, 4  ;;  %s20_s13 = int_to_ptr.vmem [resolvable:$true] %s19_s13 }
   0x3   :  { %22 = dma.hbm_to_vmem [thread:$0]  %s18_s11, 256, %s20_s13, [#allocation4]  }
   0x4   :  { %102 = dma.done.wait [#allocation4], 256  }
   0x5   :  { %103 = vsyncadd [#allocation4], 4294967040  ;;  %v30_v0 = vstv %s132_s0  ;;  %s107_s16 = smov [#allocation6]   ;;  %s42_s20 = sshll.u32 %s134_s2, 4  ;;  %v27_v1 = vld [vmem:[#allocation3] sm:$0xff]  ;;  %v28_v2 = vld [vmem:[#allocation3 + $0x8] sm:$0xff]  ;;  %s43_s20 = int_to_ptr.hbm [resolvable:$true] %s42_s20 }
   0x6   :  { %s40_s17 = sshll.u32 %s107_s16, 4  ;;  %v31_v3 = vmul.f32 %v30_v0, %v27_v1  ;;  %v32_v4 = vmul.f32 %v30_v0, %v28_v2  ;;  %s41_s17 = int_to_ptr.vmem [resolvable:$true] %s40_s17 }
   0x8   :  { %33 = vst [vmem:[#allocation6] sm:$0xff] %v31_v3 }
   0x9   :  { %34 = vst [vmem:[#allocation6 + $0x8] sm:$0xff] %v32_v4 }
   0xa   :  { %45 = dma.vmem_to_hbm [thread:$0]  %s41_s17, 256, %s43_s20, [#allocation5]  }
   0xb   :  { %104 = dma.done.wait [#allocation5], 256  }
   0xc   :  { %105 = vsyncadd [#allocation5], 4294967040 }
   0xd   :  { %50 = vsyncpa [#allocation4], 1 }
   0xe   :  { %51 = vsyncpa [#allocation5], 1 }

</bundles_post_ra>
